<compile_context>
chip_gen: v5e
topology: v5e:2x2
jax: 0.10.0
libtpu: 0.0.40
codegen_flags: <defaults>
</compile_context>

<pallas_src>
import jax
import jax.numpy as jnp
from jax import lax
from jax.experimental import pallas as pl
from jax.experimental.pallas import tpu as pltpu


def autoencoder_kernel(x_ref, w1_ref, b1_ref, w2_ref, b2_ref, o_ref):
    # Encoder: x @ W1^T + b1, with W1 in PyTorch (H, D) layout.
    # Contract last dim of x with last dim of W1 -> (tile_b, H); f32 accumulate.
    h = lax.dot_general(
        x_ref[...], w1_ref[...],
        dimension_numbers=(((1,), (1,)), ((), ())),
        preferred_element_type=jnp.float32,
    )
    h = jnp.maximum(h + b1_ref[...], 0.0)          # bias + ReLU in f32

    # Decoder: h @ W2^T + b2, with W2 in PyTorch (D, H) layout.
    # TODO(synk): for bf16 weights on v6e/v7x, cast h deliberately here
    #             (h.astype(w2_ref.dtype)) and keep f32 accumulation.
    y = lax.dot_general(
        h, w2_ref[...],
        dimension_numbers=(((1,), (1,)), ((), ())),
        preferred_element_type=jnp.float32,
    )
    o_ref[...] = jnp.maximum(y + b2_ref[...], 0.0).astype(o_ref.dtype)


def autoencoder_forward(x, w1_pt, b1, w2_pt, b2, *, tile_b=None):
    """Forward pass of the Autoencoder.

    x:     (B, D) activations.
    w1_pt: (H, D) encoder weight, PyTorch layout (no transpose needed).
    b1:    (H,)   encoder bias.
    w2_pt: (D, H) decoder weight, PyTorch layout.
    b2:    (D,)   decoder bias.
    tile_b: rows per grid step. Default = full batch (single block). For large
            batches use 256-512 (f32) to stay near the HBM roofline.
    """
    B, D = x.shape
    H, D2 = w1_pt.shape
    assert D2 == D and w2_pt.shape == (D, H)
    assert b1.shape == (H,) and b2.shape == (D,)

    if tile_b is None:
        tile_b = B                      # single block: no per-step grid overhead
    assert B % tile_b == 0, "batch must be divisible by tile_b"

    # Biases as 2D rows for clean (sublane, lane) VMEM layout; broadcast in-kernel.
    b1_2d = jnp.asarray(b1).reshape(1, H)
    b2_2d = jnp.asarray(b2).reshape(1, D)

    itemsize = jnp.dtype(x.dtype).itemsize
    cost = pl.CostEstimate(
        flops=2 * B * (D * H + H * D),
        transcendentals=0,
        bytes_accessed=itemsize * (2 * B * D + 2 * D * H + H + D),
    )

    grid = (B // tile_b,)
    return pl.pallas_call(
        autoencoder_kernel,
        out_shape=jax.ShapeDtypeStruct((B, D), x.dtype),
        grid_spec=pltpu.PrefetchScalarGridSpec(
            num_scalar_prefetch=0,
            grid=grid,
            in_specs=[
                pl.BlockSpec((tile_b, D), lambda i: (i, 0)),   # x tile
                pl.BlockSpec((H, D), lambda i: (0, 0)),        # W1 (full, resident)
                pl.BlockSpec((1, H), lambda i: (0, 0)),        # b1
                pl.BlockSpec((D, H), lambda i: (0, 0)),        # W2 (full, resident)
                pl.BlockSpec((1, D), lambda i: (0, 0)),        # b2
            ],
            out_specs=pl.BlockSpec((tile_b, D), lambda i: (i, 0)),
        ),
        compiler_params=pltpu.CompilerParams(
            dimension_semantics=("parallel",),
        ),
        cost_estimate=cost,
    )(x, w1_pt, b1_2d, w2_pt, b2_2d)


def autoencoder_ref(x, w1_pt, b1, w2_pt, b2):
    h = jnp.maximum(x @ w1_pt.T + b1, 0.0)
    y = jnp.maximum(h @ w2_pt.T + b2, 0.0)
    return y


if __name__ == "__main__":
    # Small shapes consistent with the module: batch=16, input_size=64, hidden_size=32.
    B, INPUT_SIZE, HIDDEN_SIZE = 16, 64, 32

    key = jax.random.PRNGKey(0)
    kx, kw1, kb1, kw2, kb2 = jax.random.split(key, 5)

    x = jax.random.normal(kx, (B, INPUT_SIZE), dtype=jnp.float32)

    # Deterministic parameter init mimicking PyTorch Linear default:
    # uniform(-1/sqrt(fan_in), 1/sqrt(fan_in)).
    bound1 = 1.0 / jnp.sqrt(INPUT_SIZE)
    w1_pt = jax.random.uniform(kw1, (HIDDEN_SIZE, INPUT_SIZE), jnp.float32,
                               -bound1, bound1)
    b1 = jax.random.uniform(kb1, (HIDDEN_SIZE,), jnp.float32, -bound1, bound1)

    bound2 = 1.0 / jnp.sqrt(HIDDEN_SIZE)
    w2_pt = jax.random.uniform(kw2, (INPUT_SIZE, HIDDEN_SIZE), jnp.float32,
                               -bound2, bound2)
    b2 = jax.random.uniform(kb2, (INPUT_SIZE,), jnp.float32, -bound2, bound2)

    out = autoencoder_forward(x, w1_pt, b1, w2_pt, b2)   # single block (tile_b=B)
    out = jax.block_until_ready(out)

    ref = autoencoder_ref(x, w1_pt, b1, w2_pt, b2)
    assert out.shape == (B, INPUT_SIZE)
    assert jnp.allclose(out, ref, atol=1e-5, rtol=1e-5), "mismatch vs reference"

    print("KERNEL_OK")
</pallas_src>

<mosaic_0001>
module attributes {stable_mosaic.version = 11 : i64} {
  func.func @autoencoder_kernel(%arg0: i32, %arg1: memref<16x64xf32, #tpu.memory_space<vmem>>, %arg2: memref<32x64xf32, #tpu.memory_space<vmem>>, %arg3: memref<1x32xf32, #tpu.memory_space<vmem>>, %arg4: memref<64x32xf32, #tpu.memory_space<vmem>>, %arg5: memref<1x64xf32, #tpu.memory_space<vmem>>, %arg6: memref<16x64xf32, #tpu.memory_space<vmem>>) attributes {dimension_semantics = [#tpu.dimension_semantics<parallel>], iteration_bounds = array<i64: 1>, scalar_prefetch = 0 : i64, scratch_operands = 0 : i64, tpu.core_type = #tpu.core_type<tc>, window_params = [{transform_indices = @transform_0, window_bounds = array<i64: 16, 64>}, {pipeline_mode = #tpu.pipeline_mode<synchronous>, transform_indices = @transform_1, window_bounds = array<i64: 32, 64>}, {pipeline_mode = #tpu.pipeline_mode<synchronous>, transform_indices = @transform_2, window_bounds = array<i64: 1, 32>}, {pipeline_mode = #tpu.pipeline_mode<synchronous>, transform_indices = @transform_3, window_bounds = array<i64: 64, 32>}, {pipeline_mode = #tpu.pipeline_mode<synchronous>, transform_indices = @transform_4, window_bounds = array<i64: 1, 64>}, {transform_indices = @transform_5, window_bounds = array<i64: 16, 64>}]} {
    %c0 = arith.constant 0 : index
    %c0_0 = arith.constant 0 : index
    %0 = vector.load %arg1[%c0, %c0_0] : memref<16x64xf32, #tpu.memory_space<vmem>>, vector<16x64xf32>
    %c0_1 = arith.constant 0 : index
    %c0_2 = arith.constant 0 : index
    %1 = vector.load %arg2[%c0_1, %c0_2] : memref<32x64xf32, #tpu.memory_space<vmem>>, vector<32x64xf32>
    %cst = arith.constant dense<0.000000e+00> : vector<16x32xf32>
    %2 = tpu.matmul %0, %1, %cst {dimension_numbers = #tpu.dot_dimension_numbers<[1], [1], [0], [0], [0, 0, 1, 0], [], []>} : vector<16x64xf32>, vector<32x64xf32>, vector<16x32xf32> -> vector<16x32xf32>
    %c0_3 = arith.constant 0 : index
    %c0_4 = arith.constant 0 : index
    %3 = vector.load %arg3[%c0_3, %c0_4] : memref<1x32xf32, #tpu.memory_space<vmem>>, vector<1x32xf32>
    %4 = vector.broadcast %3 : vector<1x32xf32> to vector<16x32xf32>
    %5 = arith.addf %2, %4 : vector<16x32xf32>
    %cst_5 = arith.constant 0.000000e+00 : f32
    %6 = vector.broadcast %cst_5 : f32 to vector<16x32xf32>
    %7 = arith.maximumf %5, %6 : vector<16x32xf32>
    %c0_6 = arith.constant 0 : index
    %c0_7 = arith.constant 0 : index
    %8 = vector.load %arg4[%c0_6, %c0_7] : memref<64x32xf32, #tpu.memory_space<vmem>>, vector<64x32xf32>
    %cst_8 = arith.constant dense<0.000000e+00> : vector<16x64xf32>
    %9 = tpu.matmul %7, %8, %cst_8 {dimension_numbers = #tpu.dot_dimension_numbers<[1], [1], [0], [0], [0, 0, 1, 0], [], []>} : vector<16x32xf32>, vector<64x32xf32>, vector<16x64xf32> -> vector<16x64xf32>
    %c0_9 = arith.constant 0 : index
    %c0_10 = arith.constant 0 : index
    %10 = vector.load %arg5[%c0_9, %c0_10] : memref<1x64xf32, #tpu.memory_space<vmem>>, vector<1x64xf32>
    %11 = vector.broadcast %10 : vector<1x64xf32> to vector<16x64xf32>
    %12 = arith.addf %9, %11 : vector<16x64xf32>
    %cst_11 = arith.constant 0.000000e+00 : f32
    %13 = vector.broadcast %cst_11 : f32 to vector<16x64xf32>
    %14 = arith.maximumf %12, %13 : vector<16x64xf32>
    %c0_12 = arith.constant 0 : index
    %c0_13 = arith.constant 0 : index
    %15 = vector.load %arg6[%c0_12, %c0_13] : memref<16x64xf32, #tpu.memory_space<vmem>>, vector<16x64xf32>
    tpu.vector_store %arg6[%c0_12, %c0_13], %14 {strides = array<i32>} : memref<16x64xf32, #tpu.memory_space<vmem>>, vector<16x64xf32>,
    return
  }
  func.func @transform_0(%arg0: i32) -> (i32, i32) {
    %c0_i32 = arith.constant 0 : i32
    %c0_i32_0 = arith.constant 0 : i32
    return %arg0, %c0_i32 : i32, i32
  }
  func.func @transform_1(%arg0: i32) -> (i32, i32) {
    %c0_i32 = arith.constant 0 : i32
    %c0_i32_0 = arith.constant 0 : i32
    %c0_i32_1 = arith.constant 0 : i32
    return %c0_i32, %c0_i32_0 : i32, i32
  }
  func.func @transform_2(%arg0: i32) -> (i32, i32) {
    %c0_i32 = arith.constant 0 : i32
    %c0_i32_0 = arith.constant 0 : i32
    %c0_i32_1 = arith.constant 0 : i32
    return %c0_i32, %c0_i32_0 : i32, i32
  }
  func.func @transform_3(%arg0: i32) -> (i32, i32) {
    %c0_i32 = arith.constant 0 : i32
    %c0_i32_0 = arith.constant 0 : i32
    %c0_i32_1 = arith.constant 0 : i32
    return %c0_i32, %c0_i32_0 : i32, i32
  }
  func.func @transform_4(%arg0: i32) -> (i32, i32) {
    %c0_i32 = arith.constant 0 : i32
    %c0_i32_0 = arith.constant 0 : i32
    %c0_i32_1 = arith.constant 0 : i32
    return %c0_i32, %c0_i32_0 : i32, i32
  }
  func.func @transform_5(%arg0: i32) -> (i32, i32) {
    %c0_i32 = arith.constant 0 : i32
    %c0_i32_0 = arith.constant 0 : i32
    return %arg0, %c0_i32 : i32, i32
  }
}

</mosaic_0001>

<bundles_post_ra>
// kernel: tpu_custom_call.1
= control target key start
LH: loop header
LB: loop body
LE: loop exit
PB: predicated region body
PF: predicated region fallthrough
CT: control target
= control target key end

     0   :  { %vm31_vm0 = vcmask 523264   ;;  %vm87_vm1 = vcmask 261120   ;;  %s328_s0 = inlined_call_operand.vmem [shape: f32[16,64], index: 0, kind: input, shape index: {}]   ;;  %s329_s1 = inlined_call_operand.vmem [shape: f32[32,64], index: 1, kind: input, shape index: {}]   ;;  %s330_s2 = inlined_call_operand.vmem [shape: f32[1,32], index: 2, kind: input, shape index: {}]   ;;  %s331_s3 = inlined_call_operand.vmem [shape: f32[64,32], index: 3, kind: input, shape index: {}]   ;;  %s332_s4 = inlined_call_operand.vmem [shape: f32[1,64], index: 4, kind: input, shape index: {}]   ;;  %s333_s5 = inlined_call_operand.hbm [shape: f32[16,64], index: 5, kind: output, shape index: {}]  }
   0x1   :  { %v26_v0 = vld [vmem:[%s329_s1 + $0x18] sm:$0xff]  ;;  %v25_v1 = vld [vmem:[%s329_s1 + $0x10] sm:$0xff] }
   0x2   :  { %163 = vmatpush.xpose.msk.msra.mxu0 %vm31_vm0, %v26_v0  ;;  %v82_v2 = vld [vmem:[%s331_s3 + $0x38] sm:$0xff]  ;;  %v81_v3 = vld [vmem:[%s331_s3 + $0x30] sm:$0xff] }
   0x3   :  { %169 = vmatpush.xpose.msk.msra.mxu1 %vm87_vm1, %v82_v2  ;;  %179 = vmatpush.xpose.msk.msra.mxu2 %vm87_vm1, %v82_v2 }
   0x6   :  { %164 = vmatpush.xpose.msk.msra.mxu0 %vm31_vm0, %v25_v1 }
   0x7   :  { %10 = vsyncpa [#allocation3], 0  ;;  %v24_v4 = vld [vmem:[%s329_s1 + $0x8] sm:$0xff]  ;;  %170 = vmatpush.xpose.msk.msra.mxu1 %vm87_vm1, %v81_v3  ;;  %180 = vmatpush.xpose.msk.msra.mxu2 %vm87_vm1, %v81_v3  ;;  %v23_v6 = vld [vmem:[%s329_s1] sm:$0xff]  ;;  %s151_s25 = sshll.u32 %s333_s5, 4  ;;  %s219_s26 = smov 128   ;;  %s152_s25 = int_to_ptr.hbm [resolvable:$true] %s151_s25 }
   0x8   :  { %v80_v5 = vld [vmem:[%s331_s3 + $0x28] sm:$0xff]  ;;  %v79_v7 = vld [vmem:[%s331_s3 + $0x20] sm:$0xff]  ;;  %v78_v9 = vld [vmem:[%s331_s3 + $0x18] sm:$0xff] }
   0x9   :  { %v21_v8 = vld [vmem:[%s328_s0] sm:$0xff]  ;;  %v77_v10 = vld [vmem:[%s331_s3 + $0x10] sm:$0xff]  ;;  %v22_v11 = vld [vmem:[%s328_s0 + $0x8] sm:$0xff] }
   0xa   :  { %165 = vmatpush.xpose.msk.msra.mxu0 %vm31_vm0, %v24_v4  ;;  %v76_v12 = vld [vmem:[%s331_s3 + $0x8] sm:$0xff]  ;;  %v75_v13 = vld [vmem:[%s331_s3] sm:$0xff] }
   0xb   :  { %171 = vmatpush.xpose.msk.msra.mxu1 %vm87_vm1, %v80_v5  ;;  %181 = vmatpush.xpose.msk.msra.mxu2 %vm87_vm1, %v80_v5  ;;  %v190_v14 = vld [vmem:[%s330_s2] ss:$0 sm:$0xff]  ;;  %s218_s2 = smov [#allocation2]  }
   0xc   :  { %v191_v21 = vld [vmem:[%s332_s4] ss:$0 sm:$0xff]  ;;  %s149_s22 = sshll.u32 %s218_s2, 4  ;;  %s220_s4 = smov 8   ;;  %s150_s22 = int_to_ptr.vmem [resolvable:$true] %s149_s22 }
   0xe   :  { %166 = vmatpush.xpose.msk.msra.mxu0 %vm31_vm0, %v23_v6 }
   0xf   :  { %172 = vmatpush.xpose.msk.msra.mxu1 %vm87_vm1, %v79_v7  ;;  %182 = vmatpush.xpose.msk.msra.mxu2 %vm87_vm1, %v79_v7 }
  0x11   :  { %167 = vmatmul.msk.f32.vlgmr.msra.gmra.mxu0 %vm31_vm0, %v21_v8 }
  0x13   :  { %173 = vmatpush.xpose.msk.msra.mxu1 %vm87_vm1, %v78_v9  ;;  %183 = vmatpush.xpose.msk.msra.mxu2 %vm87_vm1, %v78_v9 }
  0x17   :  { %174 = vmatpush.xpose.msk.msra.mxu1 %vm87_vm1, %v77_v10  ;;  %184 = vmatpush.xpose.msk.msra.mxu2 %vm87_vm1, %v77_v10 }
  0x19   :  { %168 = vmatmul.msk.f32.gmra.mxu0 %vm31_vm0, %v22_v11 }
  0x1b   :  { %175 = vmatpush.xpose.msk.msra.mxu1 %vm87_vm1, %v76_v12  ;;  %185 = vmatpush.xpose.msk.msra.mxu2 %vm87_vm1, %v76_v12 }
  0x1f   :  { %176 = vmatpush.xpose.msk.msra.mxu1 %vm87_vm1, %v75_v13  ;;  %186 = vmatpush.xpose.msk.msra.mxu2 %vm87_vm1, %v75_v13 }
  0x8e   :  { %v67_v15 = vpop.f32.mrf.mxu0 }
  0x8f   :  { %v68_v16 = vadd.f32 %v190_v14, %v67_v15 }
  0x91   :  { %v73_v17 = vmax.f32 %v68_v16, 0.0 }
  0x93   :  { %177 = vmatmul.msk.f32.vlgmr.msra.gmra.mxu1 %vm87_vm1, %v73_v17 }
  0x96   :  { %v70_v18 = vpop.f32.mrf.mxu0 }
  0x97   :  { %v71_v19 = vadd.f32 %v190_v14, %v70_v18 }
  0x99   :  { %v74_v20 = vmax.f32 %v71_v19, 0.0 }
  0x9b   :  { %178 = vmatmul.msk.f32.vlgmr.msra.gmra.mxu2 %vm87_vm1, %v74_v20 }
 0x110   :  { %v135_v22 = vpop.f32.mrf.mxu1 }
 0x111   :  { %v136_v23 = vadd.f32 %v191_v21, %v135_v22 }
 0x113   :  { %v141_v24 = vmax.f32 %v136_v23, 0.0 }
 0x115   :  { %143 = vst.msk [vmem:[#allocation2] sm:$0xff] %vm31_vm0, %v141_v24 }
 0x11e   :  { %v138_v25 = vpop.f32.mrf.mxu2 }
 0x11f   :  { %v139_v26 = vadd.f32 %v191_v21, %v138_v25 }
 0x121   :  { %v142_v27 = vmax.f32 %v139_v26, 0.0 }
 0x123   :  { %144 = vst.msk [vmem:[#allocation2 + $0x8] sm:$0xff] %vm31_vm0, %v142_v27 }
 0x124   :  { %157 = dma.vmem_to_hbm [thread:$0]  %s150_s22, 256, %s152_s25, [#allocation3], %s219_s26, %s219_s26, %s220_s4  }
 0x125   :  { %216 = dma.done.wait [#allocation3], 256  }
 0x126   :  { %217 = vsyncadd [#allocation3], 4294967040 }
 0x127   :  { %162 = vsyncpa [#allocation3], 1 }

</bundles_post_ra>
